<compile_context>
chip_gen: v7x
topology: tpu7x:2x2x1
jax: 0.10.0
libtpu: 0.0.40
codegen_flags: <defaults>
</compile_context>

<pallas_src>
import functools
import math

import jax
import jax.numpy as jnp
from jax.experimental import pallas as pl
from jax.experimental.pallas import tpu as pltpu


def _attention_head_kernel(x_ref, maskb_ref, w_ref, b_ref, o_ref, *,
                           matmul_dtype, approx_recip):
    bt, s, dim_inp = x_ref.shape          # one batch tile per grid step
    dim_out = o_ref.shape[-1]

    # ---- Fused Q|K|V projection: one big MXU matmul over (bt*S) rows. ----
    x2 = x_ref[...].reshape(bt * s, dim_inp).astype(matmul_dtype)
    w = w_ref[...].astype(matmul_dtype)                       # (dim_inp, 3*dim_out)
    qkv = jnp.dot(x2, w, preferred_element_type=jnp.float32)  # (bt*s, 3*dim_out) f32
    qkv = qkv + b_ref[...]                                    # bias (1, 3*dim_out)
    qkv = qkv.reshape(bt, s, 3 * dim_out)

    q = qkv[:, :, 0:dim_out]
    k = qkv[:, :, dim_out:2 * dim_out]
    v = qkv[:, :, 2 * dim_out:]

    # ---- Scores: batched contraction on the last axes (no explicit k.T). ----
    # PyTorch scales by query.size(1)**0.5 == sqrt(seq_len), reproduced exactly.
    scale = 1.0 / math.sqrt(float(s))
    scores = jnp.einsum(
        "bqd,bkd->bqk",
        q.astype(matmul_dtype), k.astype(matmul_dtype),
        preferred_element_type=jnp.float32) * scale           # (bt, s, s) f32

    # Additive mask bias (-1e9 at masked keys), broadcast over query rows.
    scores = scores + maskb_ref[...]                          # (bt, 1, s)

    # ---- Numerically stable softmax, all in f32 (v5e-safe). ----
    m = jnp.max(scores, axis=-1, keepdims=True)
    e = jnp.exp(scores - m)
    denom = jnp.sum(e, axis=-1, keepdims=True)
    attn = e * pl.reciprocal(denom, approx=approx_recip)

    # ---- Context: attn @ V (batched, f32 accumulation). ----
    ctx = jnp.einsum(
        "bqk,bkd->bqd",
        attn.astype(matmul_dtype), v.astype(matmul_dtype),
        preferred_element_type=jnp.float32)                   # (bt, s, dim_out)

    o_ref[...] = ctx.astype(o_ref.dtype)


def attention_head(x, mask, wq, bq, wk, bk, wv, bv, *,
                   batch_block=8,
                   matmul_dtype=jnp.bfloat16,
                   approx_recip=True,
                   vmem_limit_bytes=32 * 1024 * 1024):
    """x: (B, S, dim_inp) f32, mask: (B, 1, S) int -> (B, S, dim_out) f32.

    Mirrors PyTorch AttentionHead.forward (x @ W + b Linear convention).
    """
    B, S, dim_inp = x.shape
    dim_out = wq.shape[1]

    # Fused QKV weight / bias: one matmul per grid step instead of three.
    w_qkv = jnp.concatenate([wq, wk, wv], axis=1)                    # (dim_inp, 3*dim_out)
    b_qkv = jnp.concatenate([bq, bk, bv], axis=0).reshape(1, 3 * dim_out)

    # Precompute the additive mask bias once (replaces in-kernel compare+select).
    mask_bias = jnp.where(mask != 0, jnp.float32(-1e9),
                          jnp.float32(0.0)).astype(jnp.float32)      # (B, 1, S)

    # Batch tile: largest divisor of B not exceeding batch_block, so each grid
    # step feeds a (bt*S)-row matmul to the MXU.
    bt = min(B, batch_block)
    while B % bt:
        bt -= 1
    grid = (B // bt,)

    kernel = functools.partial(_attention_head_kernel,
                               matmul_dtype=matmul_dtype,
                               approx_recip=approx_recip)

    grid_spec = pltpu.PrefetchScalarGridSpec(
        num_scalar_prefetch=0,
        grid=grid,
        in_specs=[
            pl.BlockSpec((bt, S, dim_inp), lambda i: (i, 0, 0)),        # x tile
            pl.BlockSpec((bt, 1, S),       lambda i: (i, 0, 0)),        # mask bias tile
            pl.BlockSpec((dim_inp, 3 * dim_out), lambda i: (0, 0)),     # fused W (grid-invariant)
            pl.BlockSpec((1, 3 * dim_out),       lambda i: (0, 0)),     # fused b (grid-invariant)
        ],
        out_specs=pl.BlockSpec((bt, S, dim_out), lambda i: (i, 0, 0)),
    )

    return pl.pallas_call(
        kernel,
        out_shape=jax.ShapeDtypeStruct((B, S, dim_out), jnp.float32),
        grid_spec=grid_spec,
        compiler_params=pltpu.CompilerParams(
            dimension_semantics=("parallel",),
            vmem_limit_bytes=vmem_limit_bytes),
    )(x, mask_bias, w_qkv, b_qkv)


def attention_head_ref(x, mask, wq, bq, wk, bk, wv, bv):
    """Pure-JAX reference mirroring the PyTorch forward."""
    q = x @ wq + bq
    k = x @ wk + bk
    v = x @ wv + bv
    scale = math.sqrt(float(q.shape[1]))            # query.size(1) == S
    scores = jnp.einsum("bqd,bkd->bqk", q, k) / scale
    scores = jnp.where(mask != 0, -1e9, scores)     # broadcast (B,1,S) -> (B,S,S)
    attn = jax.nn.softmax(scores, axis=-1)
    return jnp.einsum("bqk,bkd->bqd", attn, v)


if __name__ == "__main__":
    B, S, DIM_INP, DIM_OUT = 2, 8, 32, 16

    key = jax.random.PRNGKey(0)
    kx, kq, kbq, kk, kbk, kv, kbv = jax.random.split(key, 7)

    x = jax.random.normal(kx, (B, S, DIM_INP), dtype=jnp.float32)

    bound = 1.0 / math.sqrt(DIM_INP)
    wq = jax.random.uniform(kq,  (DIM_INP, DIM_OUT), jnp.float32, -bound, bound)
    bq = jax.random.uniform(kbq, (DIM_OUT,),         jnp.float32, -bound, bound)
    wk = jax.random.uniform(kk,  (DIM_INP, DIM_OUT), jnp.float32, -bound, bound)
    bk = jax.random.uniform(kbk, (DIM_OUT,),         jnp.float32, -bound, bound)
    wv = jax.random.uniform(kv,  (DIM_INP, DIM_OUT), jnp.float32, -bound, bound)
    bv = jax.random.uniform(kbv, (DIM_OUT,),         jnp.float32, -bound, bound)

    # Padding-style mask: mask out the last two key positions of batch 1.
    mask = jnp.zeros((B, 1, S), dtype=jnp.int32)
    mask = mask.at[1, 0, -2:].set(1)

    ref = attention_head_ref(x, mask, wq, bq, wk, bk, wv, bv)

    # Precise path: f32 MXU operands + exact reciprocal -> tight tolerance.
    out_precise = attention_head(x, mask, wq, bq, wk, bk, wv, bv,
                                 matmul_dtype=jnp.float32, approx_recip=False)
    out_precise = jax.block_until_ready(out_precise)
    assert out_precise.shape == (B, S, DIM_OUT)
    assert jnp.allclose(out_precise, ref, atol=1e-5, rtol=1e-5), \
        "precise-path mismatch vs reference"

    # Fast (default) path: bf16 MXU operands with f32 accumulation + EUP approx
    # reciprocal; numerics differ from the f32 reference at the bf16 level, so
    # the tolerance is correspondingly looser.
    out_fast = attention_head(x, mask, wq, bq, wk, bk, wv, bv)
    out_fast = jax.block_until_ready(out_fast)
    assert out_fast.shape == (B, S, DIM_OUT)
    assert jnp.allclose(out_fast, ref, atol=3e-2, rtol=3e-2), \
        "fast-path mismatch vs reference"

    print("KERNEL_OK")
</pallas_src>

<mosaic_0001>
module attributes {stable_mosaic.version = 11 : i64} {
  func.func @_attention_head_kernel(%arg0: i32, %arg1: memref<2x8x32xf32, #tpu.memory_space<vmem>>, %arg2: memref<2x1x8xf32, #tpu.memory_space<vmem>>, %arg3: memref<32x48xf32, #tpu.memory_space<vmem>>, %arg4: memref<1x48xf32, #tpu.memory_space<vmem>>, %arg5: memref<2x8x16xf32, #tpu.memory_space<vmem>>) attributes {dimension_semantics = [#tpu.dimension_semantics<parallel>], iteration_bounds = array<i64: 1>, scalar_prefetch = 0 : i64, scratch_operands = 0 : i64, tpu.core_type = #tpu.core_type<tc>, window_params = [{transform_indices = @transform_0, window_bounds = array<i64: 2, 8, 32>}, {transform_indices = @transform_1, window_bounds = array<i64: 2, 1, 8>}, {pipeline_mode = #tpu.pipeline_mode<synchronous>, transform_indices = @transform_2, window_bounds = array<i64: 32, 48>}, {pipeline_mode = #tpu.pipeline_mode<synchronous>, transform_indices = @transform_3, window_bounds = array<i64: 1, 48>}, {transform_indices = @transform_4, window_bounds = array<i64: 2, 8, 16>}]} {
    %c0 = arith.constant 0 : index
    %c0_0 = arith.constant 0 : index
    %c0_1 = arith.constant 0 : index
    %0 = vector.load %arg1[%c0, %c0_0, %c0_1] : memref<2x8x32xf32, #tpu.memory_space<vmem>>, vector<2x8x32xf32>
    %1 = vector.shape_cast %0 : vector<2x8x32xf32> to vector<16x32xf32>
    %c0_2 = arith.constant 0 : index
    %c0_3 = arith.constant 0 : index
    %2 = vector.load %arg3[%c0_2, %c0_3] : memref<32x48xf32, #tpu.memory_space<vmem>>, vector<32x48xf32>
    %cst = arith.constant dense<0.000000e+00> : vector<16x48xf32>
    %3 = tpu.matmul %1, %2, %cst {dimension_numbers = #tpu.dot_dimension_numbers<[1], [0], [0], [1], [0, 0, 1, 1], [], []>} : vector<16x32xf32>, vector<32x48xf32>, vector<16x48xf32> -> vector<16x48xf32>
    %c0_4 = arith.constant 0 : index
    %c0_5 = arith.constant 0 : index
    %4 = vector.load %arg4[%c0_4, %c0_5] : memref<1x48xf32, #tpu.memory_space<vmem>>, vector<1x48xf32>
    %5 = vector.broadcast %4 : vector<1x48xf32> to vector<16x48xf32>
    %6 = arith.addf %3, %5 : vector<16x48xf32>
    %7 = vector.shape_cast %6 : vector<16x48xf32> to vector<2x8x48xf32>
    %8 = vector.extract_strided_slice %7 {offsets = [0, 0, 0], sizes = [2, 8, 16], strides = [1, 1, 1]} : vector<2x8x48xf32> to vector<2x8x16xf32>
    %9 = vector.extract_strided_slice %7 {offsets = [0, 0, 16], sizes = [2, 8, 16], strides = [1, 1, 1]} : vector<2x8x48xf32> to vector<2x8x16xf32>
    %10 = vector.extract_strided_slice %7 {offsets = [0, 0, 32], sizes = [2, 8, 16], strides = [1, 1, 1]} : vector<2x8x48xf32> to vector<2x8x16xf32>
    "tpu.trace_start"() <{level = 10 : i32, message = "bqd,bkd->bqk"}> : () -> ()
    %cst_6 = arith.constant dense<0.000000e+00> : vector<2x8x8xf32>
    %11 = tpu.matmul %8, %9, %cst_6 {dimension_numbers = #tpu.dot_dimension_numbers<[2], [2], [1], [1], [0, 0, 0, 1, 1, 1], [0], [0]>} : vector<2x8x16xf32>, vector<2x8x16xf32>, vector<2x8x8xf32> -> vector<2x8x8xf32>
    "tpu.trace_stop"() : () -> ()
    %cst_7 = arith.constant 0.353553385 : f32
    %12 = vector.broadcast %cst_7 : f32 to vector<2x8x8xf32>
    %13 = arith.mulf %11, %12 : vector<2x8x8xf32>
    %c0_8 = arith.constant 0 : index
    %c0_9 = arith.constant 0 : index
    %c0_10 = arith.constant 0 : index
    %14 = vector.load %arg2[%c0_8, %c0_9, %c0_10] : memref<2x1x8xf32, #tpu.memory_space<vmem>>, vector<2x1x8xf32>
    %15 = vector.broadcast %14 : vector<2x1x8xf32> to vector<2x8x8xf32>
    %16 = arith.addf %13, %15 : vector<2x8x8xf32>
    %cst_11 = arith.constant dense<0xFF800000> : vector<2x8xf32>
    %17 = vector.multi_reduction <maximumf>, %16, %cst_11 [2] : vector<2x8x8xf32> to vector<2x8xf32>
    %18 = vector.shape_cast %17 : vector<2x8xf32> to vector<2x8x1xf32>
    %19 = vector.broadcast %18 : vector<2x8x1xf32> to vector<2x8x8xf32>
    %20 = arith.subf %16, %19 : vector<2x8x8xf32>
    %21 = math.exp %20 : vector<2x8x8xf32>
    %cst_12 = arith.constant dense<0.000000e+00> : vector<2x8xf32>
    %22 = vector.multi_reduction <add>, %21, %cst_12 [2] : vector<2x8x8xf32> to vector<2x8xf32>
    %23 = vector.shape_cast %22 : vector<2x8xf32> to vector<2x8x1xf32>
    %24 = tpu.reciprocal %23 : vector<2x8x1xf32> -> vector<2x8x1xf32>
    %25 = vector.broadcast %24 : vector<2x8x1xf32> to vector<2x8x8xf32>
    %26 = arith.mulf %21, %25 : vector<2x8x8xf32>
    "tpu.trace_start"() <{level = 10 : i32, message = "bqk,bkd->bqd"}> : () -> ()
    %cst_13 = arith.constant dense<0.000000e+00> : vector<2x8x16xf32>
    %27 = tpu.matmul %26, %10, %cst_13 {dimension_numbers = #tpu.dot_dimension_numbers<[2], [1], [1], [2], [0, 0, 0, 1, 1, 2], [0], [0]>} : vector<2x8x8xf32>, vector<2x8x16xf32>, vector<2x8x16xf32> -> vector<2x8x16xf32>
    "tpu.trace_stop"() : () -> ()
    %c0_14 = arith.constant 0 : index
    %c0_15 = arith.constant 0 : index
    %c0_16 = arith.constant 0 : index
    %28 = vector.load %arg5[%c0_14, %c0_15, %c0_16] : memref<2x8x16xf32, #tpu.memory_space<vmem>>, vector<2x8x16xf32>
    tpu.vector_store %arg5[%c0_14, %c0_15, %c0_16], %27 {strides = array<i32>} : memref<2x8x16xf32, #tpu.memory_space<vmem>>, vector<2x8x16xf32>,
    return
  }
  func.func @transform_0(%arg0: i32) -> (i32, i32, i32) {
    %c0_i32 = arith.constant 0 : i32
    %c0_i32_0 = arith.constant 0 : i32
    %c0_i32_1 = arith.constant 0 : i32
    return %arg0, %c0_i32, %c0_i32_0 : i32, i32, i32
  }
  func.func @transform_1(%arg0: i32) -> (i32, i32, i32) {
    %c0_i32 = arith.constant 0 : i32
    %c0_i32_0 = arith.constant 0 : i32
    %c0_i32_1 = arith.constant 0 : i32
    return %arg0, %c0_i32, %c0_i32_0 : i32, i32, i32
  }
  func.func @transform_2(%arg0: i32) -> (i32, i32) {
    %c0_i32 = arith.constant 0 : i32
    %c0_i32_0 = arith.constant 0 : i32
    %c0_i32_1 = arith.constant 0 : i32
    return %c0_i32, %c0_i32_0 : i32, i32
  }
  func.func @transform_3(%arg0: i32) -> (i32, i32) {
    %c0_i32 = arith.constant 0 : i32
    %c0_i32_0 = arith.constant 0 : i32
    %c0_i32_1 = arith.constant 0 : i32
    return %c0_i32, %c0_i32_0 : i32, i32
  }
  func.func @transform_4(%arg0: i32) -> (i32, i32, i32) {
    %c0_i32 = arith.constant 0 : i32
    %c0_i32_0 = arith.constant 0 : i32
    %c0_i32_1 = arith.constant 0 : i32
    return %arg0, %c0_i32, %c0_i32_0 : i32, i32, i32
  }
}

</mosaic_0001>

<bundles_post_ra>
// kernel: tpu_custom_call.1
= control target key start
LH: loop header
LB: loop body
LE: loop exit
PB: predicated region body
PF: predicated region fallthrough
CT: control target
= control target key end

     0   :  { %9 = vsyncpa [#allocation3], 0  ;;  %s766_s0 = inlined_call_operand.hbm [shape: f32[2,8,32], index: 0, kind: input, shape index: {}]   ;;  %s767_s1 = inlined_call_operand.vmem [shape: f32[2,1,8], index: 1, kind: input, shape index: {}]   ;;  %s768_s2 = inlined_call_operand.hbm [shape: f32[32,48], index: 2, kind: input, shape index: {}]   ;;  %s769_s3 = inlined_call_operand.vmem [shape: f32[1,48], index: 3, kind: input, shape index: {}]   ;;  %s770_s4 = inlined_call_operand.hbm [shape: f32[2,8,16], index: 4, kind: output, shape index: {}]  }
   0x1   :  { %10 = vsyncpa [#allocation6], 0 }
   0x2   :  { %11 = vsyncpa [#allocation4], 0  ;;  %s662_s15 = smov [#allocation2]   ;;  %s590_s19 = scalar_lea.hbm %s766_s0, 256 }
   0x3   :  { %s17_s16 = sshll.u32 %s662_s15, 4  ;;  %p591_p0 = scmp.ne.s32.totalorder %s766_s0, %s590_s19  ;;  %s18_s16 = int_to_ptr.vmem [resolvable:$true] %s17_s16 }
   0x4   :  { %p594_p1 = scmp.lt.u32.totalorder %s590_s19, %s766_s0 }
   0x6   :  { %p596_p2 = pnand %p594_p1, %p591_p0 }
   0x8   :  { %599 = shalt.err (!%p596_p2)
}
   0x9   :  { %s600_s24 = scalar_lea.vmem %s18_s16, 256  ;;  %p605_p4 = scmp.lt.s32.totalorder %s18_s16, %s18_s16 }
   0xa   :  { %p601_p3 = scmp.ne.s32.totalorder %s18_s16, %s600_s24  ;;  %p606_p5 = scmp.lt.s32.totalorder %s600_s24, %s600_s24 }
   0xc   :  { %p607_p6 = por %p606_p5, %p605_p4 }
   0xe   :  { %p608_p7 = pnand %p607_p6, %p601_p3 }
  0x10   :  { %611 = shalt.err (!%p608_p7)
}
  0x11   :  { %s663_s25 = smov 128   ;;  %s664_s26 = smov 8  }
  0x12   :  { %23 = dma.hbm_to_vmem [thread:$0]  %s766_s0, 256, %s18_s16, [#allocation3], %s663_s25, %s663_s25, %s664_s26  }
  0x13   :  { %s665_s29 = smov [#allocation5]   ;;  %s612_s7 = scalar_lea.hbm %s768_s2, 512 }
  0x14   :  { %s31_s30 = sshll.u32 %s665_s29, 4  ;;  %p613_p8 = scmp.ne.s32.totalorder %s768_s2, %s612_s7  ;;  %s32_s30 = int_to_ptr.vmem [resolvable:$true] %s31_s30 }
  0x15   :  { %p616_p9 = scmp.lt.u32.totalorder %s612_s7, %s768_s2 }
  0x17   :  { %p618_p10 = pnand %p616_p9, %p613_p8 }
  0x19   :  { %621 = shalt.err (!%p618_p10)
}
  0x1a   :  { %s622_s12 = scalar_lea.vmem %s32_s30, 512  ;;  %p627_p12 = scmp.lt.s32.totalorder %s32_s30, %s32_s30 }
  0x1b   :  { %p623_p11 = scmp.ne.s32.totalorder %s32_s30, %s622_s12  ;;  %p628_p13 = scmp.lt.s32.totalorder %s622_s12, %s622_s12 }
  0x1d   :  { %p629_p0 = por %p628_p13, %p627_p12 }
  0x1f   :  { %p630_p1 = pnand %p629_p0, %p623_p11 }
  0x21   :  { %633 = shalt.err (!%p630_p1)
}
  0x22   :  { %37 = dma.hbm_to_vmem [thread:$0]  %s768_s2, 512, %s32_s30, [#allocation6], %s663_s25, %s663_s25, %s664_s26  }
  0x23   :  { %656 = dma.done.wait [#allocation3], 256  }
  0x24   :  { %657 = vsyncadd [#allocation3], 4294967040 }
  0x25   :  { %658 = dma.done.wait [#allocation6], 512  }
  0x26   :  { %659 = vsyncadd [#allocation6], 4294966784  ;;  %vm59_vm0 = vcmask 261120   ;;  %v48_v0 = vld [vmem:[#allocation5] sm:$0xff]  ;;  %v49_v1 = vld [vmem:[#allocation5 + $0x8] sm:$0xff]  ;;  %v666_v8 = vmov 0.0  }
  0x27   :  { %v50_v2 = vld [vmem:[#allocation5 + $0x10] sm:$0xff]  ;;  %v565_v3 = vpack.c.bf16 %v49_v1, %v48_v0  ;;  %v51_v4 = vld [vmem:[#allocation5 + $0x18] sm:$0xff]  ;;  %545 = vmatprep.subr.mxu1 %v666_v8  ;;  %vm667_vm1 = vmmov 0   ;;  %s668_s15 = smov 112   ;;  %vm144_vm2 = vcmask 130048   ;;  %vm314_vm3 = vcmask 64512  }
  0x28   :  { %v46_v5 = vld [vmem:[#allocation2] sm:$0xff]  ;;  %v569_v6 = vpack.c.bf16 %v51_v4, %v50_v2  ;;  %v47_v7 = vld [vmem:[#allocation2 + $0x8] sm:$0xff]  ;;  %547 = vmatprep.mubr.msk.f32.mxu1 %vm667_vm1, %v666_v8  ;;  %s669_s19 = smov 96  }
  0x29   :  { %542 = vmatprep.mubr.msk.f32.mxu0 %vm59_vm0, %v46_v5  ;;  %566 = vmatprep.subr.bf16.mxu0 %v565_v3  ;;  %v509_v9 = vld [vmem:[%s769_s3] ss:$0 sm:$0xff]  ;;  %v517_v22 = vld [vmem:[%s767_s1 + $0x1] ss:$0 sm:$0xff] }
  0x2a   :  { %568 = vmatpush3.bf16.msra.mxu0 %v565_v3  ;;  %v516_v17 = vld [vmem:[%s767_s1] ss:$0 sm:$0xff]  ;;  %s670_s1 = smov [#allocation7]  }
  0x2b   :  { %570 = vmatprep.subr.bf16.mxu0 %v569_v6  ;;  %s496_s20 = sshll.u32 %s670_s1, 4  ;;  %s497_s20 = int_to_ptr.vmem [resolvable:$true] %s496_s20 }
  0x2c   :  { %s634_s21 = scalar_lea.vmem %s497_s20, 256  ;;  %p639_p3 = scmp.lt.s32.totalorder %s497_s20, %s497_s20 }
  0x2d   :  { %p635_p2 = scmp.ne.s32.totalorder %s497_s20, %s634_s21  ;;  %p640_p4 = scmp.lt.s32.totalorder %s634_s21, %s634_s21 }
  0x2e   :  { %572 = vmatpush3.bf16.msra.mxu0 %v569_v6 }
  0x2f   :  { %555 = vmatprep.subr.mxu0 %v666_v8  ;;  %p641_p5 = por %p640_p4, %p639_p3 }
  0x31   :  { %543 = vmatmul.mubr.msk.f32.vlgmr.msra.gmra.mrb[0].mxu0 %vm59_vm0, %v47_v7  ;;  %p642_p6 = pnand %p641_p5, %p635_p2 }
  0x32   :  { %557 = vmatprep.mubr.msk.f32.mxu0 %vm667_vm1, %v666_v8 }
 0x104   :  { %v544_v10 = vpop.f32.mrb[0].mxu0 }
 0x105   :  { %v132_v11 = vpop.f32.mrb[1].mxu0  ;;  %v138_v13 = vadd.f32 %v544_v10, %v509_v9 }
 0x106   :  { %v133_v12 = vadd.f32 %v509_v9, %v132_v11 }
 0x108   :  { %142 = vrot.lane.b32.xlu0 %v133_v12, %s668_s15 }
 0x10c   :  { %220 = vrot.lane.b32.xlu0 %v138_v13, %s668_s15 }
 0x17a   :  { %v143_v14 = vpop.permute.xlu0 %142 }
 0x17b   :  { %546 = vmatpush3.xpose.msk.msra.mxu1 %vm144_vm2, %v143_v14 }
 0x17c   :  { %550 = vmatprep.subr.mxu1 %v666_v8 }
 0x17e   :  { %548 = vmatmul.mubr.msk.f32.vlgmr.msra.gmra.mrb[0].mxu1 %vm144_vm2, %v133_v12  ;;  %v221_v15 = vpop.permute.xlu0 %220 }
 0x17f   :  { %551 = vmatpush3.xpose.msk.msra.mxu1 %vm144_vm2, %v221_v15  ;;  %552 = vmatprep.mubr.msk.f32.mxu1 %vm667_vm1, %v666_v8 }
 0x180   :  { %560 = vmatprep.subr.mxu1 %v666_v8 }
 0x182   :  { %553 = vmatmul.mubr.msk.f32.vlgmr.msra.gmra.mrb[2].mxu1 %vm144_vm2, %v138_v13 }
 0x183   :  { %562 = vmatprep.mubr.msk.f32.mxu1 %vm667_vm1, %v666_v8 }
 0x251   :  { %v215_v16 = vpop.f32.mrb[0].mxu1 }
 0x252   :  { %v296_v18 = vmul.f32 0.35355338, %v215_v16  ;;  %v549_v19 = vpop.f32.mrb[1].mxu1 }
 0x254   :  { %v312_v20 = vadd.f32 %v516_v17, %v296_v18 }
 0x255   :  { %v292_v21 = vpop.f32.mrb[2].mxu1 }
 0x256   :  { %v297_v23 = vmul.f32 0.35355338, %v292_v21  ;;  %v554_v24 = vpop.f32.mrb[3].mxu1  ;;  %v315_v25 = vsel %vm314_vm3, %v312_v20, -inf }
 0x257   :  { %316 = vmax.xlane.f32.xlu1 %v315_v25 }
 0x258   :  { %v313_v26 = vadd.f32 %v517_v22, %v297_v23 }
 0x25a   :  { %v318_v27 = vsel %vm314_vm3, %v313_v26, -inf }
 0x25b   :  { %319 = vmax.xlane.f32.xlu1 %v318_v27 }
 0x26c   :  { %337 = vrot.lane.b32.xlu1 %v133_v12, %s669_s19 }
 0x2e4   :  { %v317_v28 = vpop.xlane.xlu1 %316 }
 0x2e5   :  { %v321_v29 = vsub.f32 %v312_v20, %v317_v28 }
 0x2e7   :  { %v323_v30 = vmul.f32 1.442695, %v321_v29 }
 0x2e8   :  { %v320_v31 = vpop.xlane.xlu1 %319 }
 0x2e9   :  { %582 = vpow2.f32 %v323_v30  ;;  %v322_v32 = vsub.f32 %v313_v26, %v320_v31 }
 0x2eb   :  { %v325_v33 = vmul.f32 1.442695, %v322_v32 }
 0x2ec   :  { %v338_v34 = vpop.permute.xlu1 %337 }
 0x2ed   :  { %584 = vpow2.f32 %v325_v33  ;;  %556 = vmatpush3.msra.mxu0 %v338_v34 }
 0x2f3   :  { %v583_v35 = vpop.eup %582 }
 0x2f4   :  { %v327_v36 = vsel %vm314_vm3, %v583_v35, 0.0 }
 0x2f5   :  { %328 = vadd.xlane.f32.xlu0 %v327_v36 }
 0x2f7   :  { %v585_v37 = vpop.eup %584 }
 0x2f8   :  { %v330_v38 = vsel %vm314_vm3, %v585_v37, 0.0 }
 0x2f9   :  { %331 = vadd.xlane.f32.xlu1 %v330_v38 }
 0x30a   :  { %413 = vrot.lane.b32.xlu1 %v138_v13, %s669_s19 }
 0x382   :  { %v329_v39 = vpop.xlane.xlu0 %328 }
 0x383   :  { %586 = vrcp.f32 %v329_v39 }
 0x386   :  { %v332_v40 = vpop.xlane.xlu1 %331 }
 0x387   :  { %588 = vrcp.f32 %v332_v40 }
 0x38a   :  { %v414_v41 = vpop.permute.xlu1 %413 }
 0x38b   :  { %561 = vmatpush3.msra.mxu1 %v414_v41 }
 0x38d   :  { %v587_v42 = vpop.eup %586 }
 0x38e   :  { %v335_v43 = vmul.f32 %v587_v42, %v583_v35 }
 0x390   :  { %558 = vmatmul.mubr.msk.f32.vlgmr.msra.gmra.mrb[2].mxu0 %vm314_vm3, %v335_v43 }
 0x391   :  { %v589_v44 = vpop.eup %588 }
 0x392   :  { %v336_v45 = vmul.f32 %v589_v44, %v585_v37 }
 0x394   :  { %563 = vmatmul.mubr.msk.f32.vlgmr.msra.gmra.mrb[4].mxu1 %vm314_vm3, %v336_v45 }
 0x463   :  { %v409_v46 = vpop.f32.mrb[2].mxu0 }
 0x464   :  { %489 = vst.msk [vmem:[#allocation7] sm:$0xff] %vm144_vm2, %v409_v46  ;;  %v559_v47 = vpop.f32.mrb[3].mxu0 }
 0x467   :  { %v485_v48 = vpop.f32.mrb[4].mxu1 }
 0x468   :  { %490 = vst.msk [vmem:[#allocation7 + $0x8] sm:$0xff] %vm144_vm2, %v485_v48  ;;  %v564_v49 = vpop.f32.mrb[5].mxu1 }
 0x469   :  { %645 = shalt.err (!%p642_p6)
}
 0x46a   :  { %s646_s24 = scalar_lea.hbm %s770_s4, 256 }
 0x46b   :  { %p647_p7 = scmp.ne.s32.totalorder %s770_s4, %s646_s24  ;;  %p650_p8 = scmp.lt.u32.totalorder %s646_s24, %s770_s4 }
 0x46d   :  { %p652_p9 = pnand %p650_p8, %p647_p7 }
 0x46f   :  { %655 = shalt.err (!%p652_p9)
}
 0x470   :  { %502 = dma.vmem_to_hbm [thread:$0]  %s497_s20, 256, %s770_s4, [#allocation4], %s663_s25, %s663_s25, %s664_s26  }
 0x471   :  { %660 = dma.done.wait [#allocation4], 256  }
 0x472   :  { %661 = vsyncadd [#allocation4], 4294967040 }
 0x473   :  { %506 = vsyncpa [#allocation3], 1 }
 0x474   :  { %507 = vsyncpa [#allocation6], 1 }
 0x475   :  { %508 = vsyncpa [#allocation4], 1 }

</bundles_post_ra>
